<compile_context>
chip_gen: v5e
topology: v5e:2x2
jax: 0.10.0
libtpu: 0.0.40
codegen_flags: <defaults>
</compile_context>

<pallas_src>
import functools

import jax
import jax.numpy as jnp
from jax.experimental import pallas as pl
from jax.experimental.pallas import tpu as pltpu

LANE = 128


def _round_up(x, m):
    return (x + m - 1) // m * m


def _fused_resnet_kernel(x_ref, w1_ref, b1_ref, w2_ref, b2_ref, o_ref, *, K, pad, L):
    """Bt batch elements, both blocks fused.

    x_ref:  (Bt, L, Cin_p)        bf16
    w1_ref: (K, Cin_p, Cout_p)    bf16  conv1 weight, BN1 scale folded in
    b1_ref: (1, Cout_p)           f32   folded conv1+BN1 bias
    w2_ref: (K, Cout_p, Cout_p)   bf16  conv2 weight, BN2 scale folded in
    b2_ref: (1, Cout_p)           f32   folded conv2+BN2 bias
    o_ref:  (Bt, L, Cout_p)       bf16
    """
    Bt, _, Cin_p = x_ref.shape
    Cout_p = o_ref.shape[2]
    M = Bt * L

    # Flatten batch into the matmul M dimension (layout-preserving collapse).
    x2d = x_ref[...].reshape(M, Cin_p)                               # bf16
    # Within-batch position of each flattened row (for boundary masking).
    l_idx = jax.lax.broadcasted_iota(jnp.int32, (M, 1), 0) % L

    def conv_bn_lrelu(src_bf, w_ref, b_ref):
        # y[l] = sum_k w_k . src[l + k - pad]
        #      = sum_k shift(w_k . src, by pad - k)   with boundary rows masked.
        # The shifts run on the f32 matmul outputs via pltpu.roll (XLU), so the
        # MXU always sees the unshifted bf16 activations (no per-tap casts).
        acc = jnp.dot(src_bf, w_ref[pad], preferred_element_type=jnp.float32)
        for k in range(K):
            if k == pad:
                continue
            d = k - pad
            p = jnp.dot(src_bf, w_ref[k], preferred_element_type=jnp.float32)
            p = pltpu.roll(p, shift=(-d) % M, axis=0)                # f32 sublane rotate
            valid = (l_idx >= -d) if d < 0 else (l_idx < L - d)
            acc = acc + jnp.where(valid, p, 0.0)
        acc = acc + b_ref[...]                                       # folded conv+BN bias
        return jnp.where(acc >= 0, acc, 0.01 * acc)                  # LeakyReLU(0.01)

    # Stage 1: conv1 + BN1 + LeakyReLU (+ identity Dropout).  h stays in VMEM.
    h = conv_bn_lrelu(x2d, w1_ref, b1_ref)                           # f32 (M, Cout_p)
    # Stage 2: conv2 + BN2 + LeakyReLU, residual add in f32, bf16 store.
    y = conv_bn_lrelu(h.astype(jnp.bfloat16), w2_ref, b2_ref)
    o_ref[...] = (y + h).reshape(Bt, L, Cout_p).astype(o_ref.dtype)


def _fold_bn_into_conv(w_oik, conv_b, gamma, beta, mean, var, cin_p, cout_p,
                       eps=1e-5):
    """Fold eval-mode BN into conv weight/bias; pad channels to lane multiples.

    w_oik: (Cout, Cin, K) PyTorch layout.  Returns:
      w_p:    (K, cin_p, cout_p) bf16  (tap-major, BN scale folded in)
      bias_p: (1, cout_p)        f32
    """
    cout, cin, K = w_oik.shape
    scale = gamma / jnp.sqrt(var + eps)                              # (Cout,)
    bias = beta + (conv_b - mean) * scale                            # (Cout,)
    w_kio = jnp.transpose(w_oik, (2, 1, 0)) * scale[None, None, :]   # (K, Cin, Cout)
    w_kio = jnp.pad(w_kio, ((0, 0), (0, cin_p - cin), (0, cout_p - cout)))
    bias_p = jnp.pad(bias, (0, cout_p - cout)).reshape(1, cout_p)
    return w_kio.astype(jnp.bfloat16), bias_p.astype(jnp.float32)


def resnet_forward(x_ncl, params):
    """PyTorch-equivalent eval-mode forward.  x_ncl: (N, Cin, L) f32 -> (N, Cout, L) f32."""
    N, Cin, L = x_ncl.shape
    w1 = params["conv1_w"]            # (Cout, Cin, K)
    w2 = params["conv2_w"]            # (Cout, Cout, K)
    Cout, _, K = w1.shape
    assert K % 2 == 1, "ResNet spec requires odd kernel_size (same padding)"
    pad = (K - 1) // 2

    Cin_p = _round_up(Cin, LANE)
    Cout_p = _round_up(Cout, LANE)

    w1_p, b1_p = _fold_bn_into_conv(
        w1, params["conv1_b"], params["bn1_gamma"], params["bn1_beta"],
        params["bn1_mean"], params["bn1_var"], Cin_p, Cout_p)
    w2_p, b2_p = _fold_bn_into_conv(
        w2, params["conv2_b"], params["bn2_gamma"], params["bn2_beta"],
        params["bn2_mean"], params["bn2_var"], Cout_p, Cout_p)

    # Batch tile: flatten Bt batch elements into the matmul M dimension so the
    # MXU sees M = Bt*L (target >= 128).  TODO(synk): on v7x, for large N pick
    # Bt so the grid length stays >= 2 (and even) to feed both TensorCores.
    Bt = min(N, max(1, -(-128 // L)))
    N_pad = _round_up(N, Bt)

    # Single wrapper pass: NCL->NLC, batch/channel zero-pad, bf16 at HBM boundary.
    x_nlc = jnp.pad(jnp.transpose(x_ncl, (0, 2, 1)),
                    ((0, N_pad - N), (0, 0), (0, Cin_p - Cin))).astype(jnp.bfloat16)

    kernel = functools.partial(_fused_resnet_kernel, K=K, pad=pad, L=L)

    out_p = pl.pallas_call(
        kernel,
        out_shape=jax.ShapeDtypeStruct((N_pad, L, Cout_p), jnp.bfloat16),
        grid=(N_pad // Bt,),
        in_specs=[
            pl.BlockSpec((Bt, L, Cin_p), lambda n: (n, 0, 0)),
            pl.BlockSpec((K, Cin_p, Cout_p), lambda n: (0, 0, 0)),
            pl.BlockSpec((1, Cout_p), lambda n: (0, 0)),
            pl.BlockSpec((K, Cout_p, Cout_p), lambda n: (0, 0, 0)),
            pl.BlockSpec((1, Cout_p), lambda n: (0, 0)),
        ],
        out_specs=pl.BlockSpec((Bt, L, Cout_p), lambda n: (n, 0, 0)),
        compiler_params=pltpu.CompilerParams(
            dimension_semantics=("parallel",),
        ),
    )(x_nlc, w1_p, b1_p, w2_p, b2_p)

    # Single output pass: drop batch/channel padding, NLC->NCL, back to f32.
    return jnp.transpose(out_p[:N, :, :Cout], (0, 2, 1)).astype(jnp.float32)


# ----------------------- pure-JAX f32 reference (for checking) -----------------------
def _ref_block(x_ncl, w, b, gamma, beta, mean, var, eps=1e-5):
    K = w.shape[2]
    pad = (K - 1) // 2
    y = jax.lax.conv_general_dilated(
        x_ncl, w, window_strides=(1,), padding=[(pad, pad)],
        dimension_numbers=("NCH", "OIH", "NCH"))
    y = y + b[None, :, None]
    y = (y - mean[None, :, None]) / jnp.sqrt(var[None, :, None] + eps)
    y = y * gamma[None, :, None] + beta[None, :, None]
    return jnp.where(y >= 0, y, 0.01 * y)


def resnet_reference(x_ncl, p):
    h = _ref_block(x_ncl, p["conv1_w"], p["conv1_b"], p["bn1_gamma"],
                   p["bn1_beta"], p["bn1_mean"], p["bn1_var"])
    out = _ref_block(h, p["conv2_w"], p["conv2_b"], p["bn2_gamma"],
                     p["bn2_beta"], p["bn2_mean"], p["bn2_var"]) + h
    return out


if __name__ == "__main__":
    # small shapes: batch=2, in_features=4, out_features=8, kernel_size=3, seq_len=16
    N, Cin, Cout, K, L = 2, 4, 8, 3, 16

    key = jax.random.PRNGKey(0)
    ks = jax.random.split(key, 12)

    params = {
        "conv1_w": 0.1 * jax.random.normal(ks[0], (Cout, Cin, K), jnp.float32),
        "conv1_b": 0.1 * jax.random.normal(ks[1], (Cout,), jnp.float32),
        "bn1_gamma": 1.0 + 0.1 * jax.random.normal(ks[2], (Cout,), jnp.float32),
        "bn1_beta": 0.1 * jax.random.normal(ks[3], (Cout,), jnp.float32),
        "bn1_mean": 0.1 * jax.random.normal(ks[4], (Cout,), jnp.float32),
        "bn1_var": jax.random.uniform(ks[5], (Cout,), jnp.float32, 0.5, 1.5),
        "conv2_w": 0.1 * jax.random.normal(ks[6], (Cout, Cout, K), jnp.float32),
        "conv2_b": 0.1 * jax.random.normal(ks[7], (Cout,), jnp.float32),
        "bn2_gamma": 1.0 + 0.1 * jax.random.normal(ks[8], (Cout,), jnp.float32),
        "bn2_beta": 0.1 * jax.random.normal(ks[9], (Cout,), jnp.float32),
        "bn2_mean": 0.1 * jax.random.normal(ks[10], (Cout,), jnp.float32),
        "bn2_var": jax.random.uniform(ks[11], (Cout,), jnp.float32, 0.5, 1.5),
    }

    x = jax.random.normal(jax.random.PRNGKey(1), (N, Cin, L), jnp.float32)

    out = jax.jit(resnet_forward)(x, params)
    out = jax.block_until_ready(out)

    ref = resnet_reference(x, params)
    assert out.shape == (N, Cout, L), out.shape
    max_err = float(jnp.max(jnp.abs(out - ref)))
    # bf16 activation/weight/output I/O introduces ~1e-3..1e-2 absolute error vs f32.
    assert jnp.allclose(out, ref, atol=3e-2, rtol=3e-2), max_err

    print("KERNEL_OK")
</pallas_src>

<mosaic_0001>
module attributes {stable_mosaic.version = 11 : i64} {
  func.func @_fused_resnet_kernel(%arg0: i32, %arg1: memref<2x16x128xbf16, #tpu.memory_space<vmem>>, %arg2: memref<3x128x128xbf16, #tpu.memory_space<vmem>>, %arg3: memref<1x128xf32, #tpu.memory_space<vmem>>, %arg4: memref<3x128x128xbf16, #tpu.memory_space<vmem>>, %arg5: memref<1x128xf32, #tpu.memory_space<vmem>>, %arg6: memref<2x16x128xbf16, #tpu.memory_space<vmem>>) attributes {dimension_semantics = [#tpu.dimension_semantics<parallel>], iteration_bounds = array<i64: 1>, scalar_prefetch = 0 : i64, scratch_operands = 0 : i64, tpu.core_type = #tpu.core_type<tc>, window_params = [{transform_indices = @transform_0, window_bounds = array<i64: 2, 16, 128>}, {pipeline_mode = #tpu.pipeline_mode<synchronous>, transform_indices = @transform_1, window_bounds = array<i64: 3, 128, 128>}, {pipeline_mode = #tpu.pipeline_mode<synchronous>, transform_indices = @transform_2, window_bounds = array<i64: 1, 128>}, {pipeline_mode = #tpu.pipeline_mode<synchronous>, transform_indices = @transform_3, window_bounds = array<i64: 3, 128, 128>}, {pipeline_mode = #tpu.pipeline_mode<synchronous>, transform_indices = @transform_4, window_bounds = array<i64: 1, 128>}, {transform_indices = @transform_5, window_bounds = array<i64: 2, 16, 128>}]} {
    %c0 = arith.constant 0 : index
    %c0_0 = arith.constant 0 : index
    %c0_1 = arith.constant 0 : index
    %0 = vector.load %arg1[%c0, %c0_0, %c0_1] : memref<2x16x128xbf16, #tpu.memory_space<vmem>>, vector<2x16x128xbf16>
    %1 = vector.shape_cast %0 : vector<2x16x128xbf16> to vector<32x128xbf16>
    %2 = tpu.iota {dimensions = array<i32: 0>} : vector<32x1xi32>
    %c16_i32 = arith.constant 16 : i32
    %c0_i32 = arith.constant 0 : i32
    %3 = arith.cmpi eq, %c16_i32, %c0_i32 : i32
    %c1_i32 = arith.constant 1 : i32
    %4 = arith.select %3, %c1_i32, %c16_i32 : i32
    %5 = vector.broadcast %4 : i32 to vector<32x1xi32>
    %6 = arith.remsi %2, %5 : vector<32x1xi32>
    %c0_i32_2 = arith.constant 0 : i32
    %7 = vector.broadcast %c0_i32_2 : i32 to vector<32x1xi32>
    %8 = arith.cmpi ne, %6, %7 : vector<32x1xi32>
    %c0_i32_3 = arith.constant 0 : i32
    %9 = vector.broadcast %c0_i32_3 : i32 to vector<32x1xi32>
    %10 = arith.cmpi slt, %6, %9 : vector<32x1xi32>
    %c0_i32_4 = arith.constant 0 : i32
    %11 = arith.cmpi slt, %4, %c0_i32_4 : i32
    %12 = vector.broadcast %11 : i1 to vector<32x1xi1>
    %13 = vector.broadcast %12 : vector<32x1xi1> to vector<32x1xi1>
    %14 = arith.xori %10, %13 : vector<32x1xi1>
    %15 = arith.andi %14, %8 : vector<32x1xi1>
    %16 = vector.broadcast %4 : i32 to vector<32x1xi32>
    %17 = arith.addi %6, %16 : vector<32x1xi32>
    %18 = arith.select %15, %17, %6 : vector<32x1xi1>, vector<32x1xi32>
    %c1 = arith.constant 1 : index
    %c0_5 = arith.constant 0 : index
    %c0_6 = arith.constant 0 : index
    %19 = vector.load %arg2[%c1, %c0_5, %c0_6] : memref<3x128x128xbf16, #tpu.memory_space<vmem>>, vector<1x128x128xbf16>
    %20 = vector.shape_cast %19 : vector<1x128x128xbf16> to vector<128x128xbf16>
    %cst = arith.constant dense<0.000000e+00> : vector<32x128xf32>
    %21 = tpu.matmul %1, %20, %cst {dimension_numbers = #tpu.dot_dimension_numbers<[1], [0], [0], [1], [0, 0, 1, 1], [], []>} : vector<32x128xbf16>, vector<128x128xbf16>, vector<32x128xf32> -> vector<32x128xf32>
    %c0_7 = arith.constant 0 : index
    %c0_8 = arith.constant 0 : index
    %c0_9 = arith.constant 0 : index
    %22 = vector.load %arg2[%c0_7, %c0_8, %c0_9] : memref<3x128x128xbf16, #tpu.memory_space<vmem>>, vector<1x128x128xbf16>
    %23 = vector.shape_cast %22 : vector<1x128x128xbf16> to vector<128x128xbf16>
    %cst_10 = arith.constant dense<0.000000e+00> : vector<32x128xf32>
    %24 = tpu.matmul %1, %23, %cst_10 {dimension_numbers = #tpu.dot_dimension_numbers<[1], [0], [0], [1], [0, 0, 1, 1], [], []>} : vector<32x128xbf16>, vector<128x128xbf16>, vector<32x128xf32> -> vector<32x128xf32>
    %c1_i32_11 = arith.constant 1 : i32
    %25 = tpu.dynamic_rotate %24 by %c1_i32_11 dim 0 : vector<32x128xf32>, i32 -> vector<32x128xf32>
    %c1_i32_12 = arith.constant 1 : i32
    %26 = vector.broadcast %c1_i32_12 : i32 to vector<32x1xi32>
    %27 = arith.cmpi sge, %18, %26 : vector<32x1xi32>
    %cst_13 = arith.constant 0.000000e+00 : f32
    %28 = vector.shape_cast %27 : vector<32x1xi1> to vector<32x1xi1>
    %29 = vector.broadcast %28 : vector<32x1xi1> to vector<32x128xi1>
    %30 = vector.broadcast %cst_13 : f32 to vector<32x128xf32>
    %31 = arith.select %29, %25, %30 : vector<32x128xi1>, vector<32x128xf32>
    %32 = arith.addf %21, %31 : vector<32x128xf32>
    %c2 = arith.constant 2 : index
    %c0_14 = arith.constant 0 : index
    %c0_15 = arith.constant 0 : index
    %33 = vector.load %arg2[%c2, %c0_14, %c0_15] : memref<3x128x128xbf16, #tpu.memory_space<vmem>>, vector<1x128x128xbf16>
    %34 = vector.shape_cast %33 : vector<1x128x128xbf16> to vector<128x128xbf16>
    %cst_16 = arith.constant dense<0.000000e+00> : vector<32x128xf32>
    %35 = tpu.matmul %1, %34, %cst_16 {dimension_numbers = #tpu.dot_dimension_numbers<[1], [0], [0], [1], [0, 0, 1, 1], [], []>} : vector<32x128xbf16>, vector<128x128xbf16>, vector<32x128xf32> -> vector<32x128xf32>
    %c31_i32 = arith.constant 31 : i32
    %36 = tpu.dynamic_rotate %35 by %c31_i32 dim 0 : vector<32x128xf32>, i32 -> vector<32x128xf32>
    %c15_i32 = arith.constant 15 : i32
    %37 = vector.broadcast %c15_i32 : i32 to vector<32x1xi32>
    %38 = arith.cmpi slt, %18, %37 : vector<32x1xi32>
    %cst_17 = arith.constant 0.000000e+00 : f32
    %39 = vector.shape_cast %38 : vector<32x1xi1> to vector<32x1xi1>
    %40 = vector.broadcast %39 : vector<32x1xi1> to vector<32x128xi1>
    %41 = vector.broadcast %cst_17 : f32 to vector<32x128xf32>
    %42 = arith.select %40, %36, %41 : vector<32x128xi1>, vector<32x128xf32>
    %43 = arith.addf %32, %42 : vector<32x128xf32>
    %c0_18 = arith.constant 0 : index
    %c0_19 = arith.constant 0 : index
    %44 = vector.load %arg3[%c0_18, %c0_19] : memref<1x128xf32, #tpu.memory_space<vmem>>, vector<1x128xf32>
    %45 = vector.broadcast %44 : vector<1x128xf32> to vector<32x128xf32>
    %46 = arith.addf %43, %45 : vector<32x128xf32>
    %cst_20 = arith.constant 0.000000e+00 : f32
    %47 = vector.broadcast %cst_20 : f32 to vector<32x128xf32>
    %48 = arith.cmpf oge, %46, %47 : vector<32x128xf32>
    %cst_21 = arith.constant 0.00999999977 : f32
    %49 = vector.broadcast %cst_21 : f32 to vector<32x128xf32>
    %50 = arith.mulf %49, %46 : vector<32x128xf32>
    %51 = arith.select %48, %46, %50 : vector<32x128xi1>, vector<32x128xf32>
    %52 = arith.truncf %51 : vector<32x128xf32> to vector<32x128xbf16>
    %c1_22 = arith.constant 1 : index
    %c0_23 = arith.constant 0 : index
    %c0_24 = arith.constant 0 : index
    %53 = vector.load %arg4[%c1_22, %c0_23, %c0_24] : memref<3x128x128xbf16, #tpu.memory_space<vmem>>, vector<1x128x128xbf16>
    %54 = vector.shape_cast %53 : vector<1x128x128xbf16> to vector<128x128xbf16>
    %cst_25 = arith.constant dense<0.000000e+00> : vector<32x128xf32>
    %55 = tpu.matmul %52, %54, %cst_25 {dimension_numbers = #tpu.dot_dimension_numbers<[1], [0], [0], [1], [0, 0, 1, 1], [], []>} : vector<32x128xbf16>, vector<128x128xbf16>, vector<32x128xf32> -> vector<32x128xf32>
    %c0_26 = arith.constant 0 : index
    %c0_27 = arith.constant 0 : index
    %c0_28 = arith.constant 0 : index
    %56 = vector.load %arg4[%c0_26, %c0_27, %c0_28] : memref<3x128x128xbf16, #tpu.memory_space<vmem>>, vector<1x128x128xbf16>
    %57 = vector.shape_cast %56 : vector<1x128x128xbf16> to vector<128x128xbf16>
    %cst_29 = arith.constant dense<0.000000e+00> : vector<32x128xf32>
    %58 = tpu.matmul %52, %57, %cst_29 {dimension_numbers = #tpu.dot_dimension_numbers<[1], [0], [0], [1], [0, 0, 1, 1], [], []>} : vector<32x128xbf16>, vector<128x128xbf16>, vector<32x128xf32> -> vector<32x128xf32>
    %c1_i32_30 = arith.constant 1 : i32
    %59 = tpu.dynamic_rotate %58 by %c1_i32_30 dim 0 : vector<32x128xf32>, i32 -> vector<32x128xf32>
    %c1_i32_31 = arith.constant 1 : i32
    %60 = vector.broadcast %c1_i32_31 : i32 to vector<32x1xi32>
    %61 = arith.cmpi sge, %18, %60 : vector<32x1xi32>
    %cst_32 = arith.constant 0.000000e+00 : f32
    %62 = vector.shape_cast %61 : vector<32x1xi1> to vector<32x1xi1>
    %63 = vector.broadcast %62 : vector<32x1xi1> to vector<32x128xi1>
    %64 = vector.broadcast %cst_32 : f32 to vector<32x128xf32>
    %65 = arith.select %63, %59, %64 : vector<32x128xi1>, vector<32x128xf32>
    %66 = arith.addf %55, %65 : vector<32x128xf32>
    %c2_33 = arith.constant 2 : index
    %c0_34 = arith.constant 0 : index
    %c0_35 = arith.constant 0 : index
    %67 = vector.load %arg4[%c2_33, %c0_34, %c0_35] : memref<3x128x128xbf16, #tpu.memory_space<vmem>>, vector<1x128x128xbf16>
    %68 = vector.shape_cast %67 : vector<1x128x128xbf16> to vector<128x128xbf16>
    %cst_36 = arith.constant dense<0.000000e+00> : vector<32x128xf32>
    %69 = tpu.matmul %52, %68, %cst_36 {dimension_numbers = #tpu.dot_dimension_numbers<[1], [0], [0], [1], [0, 0, 1, 1], [], []>} : vector<32x128xbf16>, vector<128x128xbf16>, vector<32x128xf32> -> vector<32x128xf32>
    %c31_i32_37 = arith.constant 31 : i32
    %70 = tpu.dynamic_rotate %69 by %c31_i32_37 dim 0 : vector<32x128xf32>, i32 -> vector<32x128xf32>
    %c15_i32_38 = arith.constant 15 : i32
    %71 = vector.broadcast %c15_i32_38 : i32 to vector<32x1xi32>
    %72 = arith.cmpi slt, %18, %71 : vector<32x1xi32>
    %cst_39 = arith.constant 0.000000e+00 : f32
    %73 = vector.shape_cast %72 : vector<32x1xi1> to vector<32x1xi1>
    %74 = vector.broadcast %73 : vector<32x1xi1> to vector<32x128xi1>
    %75 = vector.broadcast %cst_39 : f32 to vector<32x128xf32>
    %76 = arith.select %74, %70, %75 : vector<32x128xi1>, vector<32x128xf32>
    %77 = arith.addf %66, %76 : vector<32x128xf32>
    %c0_40 = arith.constant 0 : index
    %c0_41 = arith.constant 0 : index
    %78 = vector.load %arg5[%c0_40, %c0_41] : memref<1x128xf32, #tpu.memory_space<vmem>>, vector<1x128xf32>
    %79 = vector.broadcast %78 : vector<1x128xf32> to vector<32x128xf32>
    %80 = arith.addf %77, %79 : vector<32x128xf32>
    %cst_42 = arith.constant 0.000000e+00 : f32
    %81 = vector.broadcast %cst_42 : f32 to vector<32x128xf32>
    %82 = arith.cmpf oge, %80, %81 : vector<32x128xf32>
    %cst_43 = arith.constant 0.00999999977 : f32
    %83 = vector.broadcast %cst_43 : f32 to vector<32x128xf32>
    %84 = arith.mulf %83, %80 : vector<32x128xf32>
    %85 = arith.select %82, %80, %84 : vector<32x128xi1>, vector<32x128xf32>
    %86 = arith.addf %85, %51 : vector<32x128xf32>
    %87 = vector.shape_cast %86 : vector<32x128xf32> to vector<2x16x128xf32>
    %88 = arith.truncf %87 : vector<2x16x128xf32> to vector<2x16x128xbf16>
    %c0_44 = arith.constant 0 : index
    %c0_45 = arith.constant 0 : index
    %c0_46 = arith.constant 0 : index
    %89 = vector.load %arg6[%c0_44, %c0_45, %c0_46] : memref<2x16x128xbf16, #tpu.memory_space<vmem>>, vector<2x16x128xbf16>
    tpu.vector_store %arg6[%c0_44, %c0_45, %c0_46], %88 {strides = array<i32>} : memref<2x16x128xbf16, #tpu.memory_space<vmem>>, vector<2x16x128xbf16>,
    return
  }
  func.func @transform_0(%arg0: i32) -> (i32, i32, i32) {
    %c0_i32 = arith.constant 0 : i32
    %c0_i32_0 = arith.constant 0 : i32
    %c0_i32_1 = arith.constant 0 : i32
    return %arg0, %c0_i32, %c0_i32_0 : i32, i32, i32
  }
  func.func @transform_1(%arg0: i32) -> (i32, i32, i32) {
    %c0_i32 = arith.constant 0 : i32
    %c0_i32_0 = arith.constant 0 : i32
    %c0_i32_1 = arith.constant 0 : i32
    %c0_i32_2 = arith.constant 0 : i32
    return %c0_i32, %c0_i32_0, %c0_i32_1 : i32, i32, i32
  }
  func.func @transform_2(%arg0: i32) -> (i32, i32) {
    %c0_i32 = arith.constant 0 : i32
    %c0_i32_0 = arith.constant 0 : i32
    %c0_i32_1 = arith.constant 0 : i32
    return %c0_i32, %c0_i32_0 : i32, i32
  }
  func.func @transform_3(%arg0: i32) -> (i32, i32, i32) {
    %c0_i32 = arith.constant 0 : i32
    %c0_i32_0 = arith.constant 0 : i32
    %c0_i32_1 = arith.constant 0 : i32
    %c0_i32_2 = arith.constant 0 : i32
    return %c0_i32, %c0_i32_0, %c0_i32_1 : i32, i32, i32
  }
  func.func @transform_4(%arg0: i32) -> (i32, i32) {
    %c0_i32 = arith.constant 0 : i32
    %c0_i32_0 = arith.constant 0 : i32
    %c0_i32_1 = arith.constant 0 : i32
    return %c0_i32, %c0_i32_0 : i32, i32
  }
  func.func @transform_5(%arg0: i32) -> (i32, i32, i32) {
    %c0_i32 = arith.constant 0 : i32
    %c0_i32_0 = arith.constant 0 : i32
    %c0_i32_1 = arith.constant 0 : i32
    return %arg0, %c0_i32, %c0_i32_0 : i32, i32, i32
  }
}

</mosaic_0001>

<bundles_post_ra>
// kernel: resnet_forward.1
= control target key start
LH: loop header
LB: loop body
LE: loop exit
PB: predicated region body
PF: predicated region fallthrough
CT: control target
= control target key end

     0   :  { %v24_v54 = vlaneseq  ;;  %s1362_s1 = inlined_call_operand.vmem [shape: bf16[3,128,128], index: 1, kind: input, shape index: {}]   ;;  %s1363_s0 = inlined_call_operand.vmem [shape: bf16[2,16,128], index: 0, kind: input, shape index: {}]   ;;  %s1364_s2 = inlined_call_operand.vmem [shape: f32[1,128], index: 2, kind: input, shape index: {}]   ;;  %s1365_s3 = inlined_call_operand.vmem [shape: bf16[3,128,128], index: 3, kind: input, shape index: {}]   ;;  %s1366_s4 = inlined_call_operand.vmem [shape: f32[1,128], index: 4, kind: input, shape index: {}]   ;;  %s1367_s5 = inlined_call_operand.vmem [shape: bf16[2,16,128], index: 5, kind: output, shape index: {}]  }
   0x1   :  { %v1012_v0 = vld [vmem:[%s1362_s1 + $0x38] sm:$0xff]  ;;  %v1011_v3 = vld [vmem:[%s1362_s1 + $0x30] sm:$0xff]  ;;  %v1010_v6 = vld [vmem:[%s1362_s1 + $0x28] sm:$0xff] }
   0x2   :  { %v1020_v1 = vld [vmem:[%s1362_s1 + $0xb8] sm:$0xff]  ;;  %170 = vmatpush.bf16.msra.mxu0 %v1012_v0  ;;  %v1019_v4 = vld [vmem:[%s1362_s1 + $0xb0] sm:$0xff]  ;;  %v1018_v7 = vld [vmem:[%s1362_s1 + $0xa8] sm:$0xff]  ;;  %v1260_v56 = vshrl.u32 %v24_v54, 7 }
   0x3   :  { %v1004_v2 = vld [vmem:[%s1362_s1 + $0x78] sm:$0xff]  ;;  %346 = vmatpush.bf16.msra.mxu2 %v1020_v1  ;;  %v1003_v5 = vld [vmem:[%s1362_s1 + $0x70] sm:$0xff]  ;;  %v1002_v8 = vld [vmem:[%s1362_s1 + $0x68] sm:$0xff] }
   0x4   :  { %262 = vmatpush.bf16.msra.mxu1 %v1004_v2  ;;  %v1009_v9 = vld [vmem:[%s1362_s1 + $0x20] sm:$0xff]  ;;  %v1008_v12 = vld [vmem:[%s1362_s1 + $0x18] sm:$0xff]  ;;  %v1007_v15 = vld [vmem:[%s1362_s1 + $0x10] sm:$0xff]  ;;  %v26_v58 = vadd.s32 8, %v1260_v56  ;;  %v27_v61 = vadd.s32 16, %v1260_v56  ;;  %vm193_vm0 = vcmp.lt.s32.totalorder %v1260_v56, 1 }
   0x5   :  { %v1017_v10 = vld [vmem:[%s1362_s1 + $0xa0] sm:$0xff]  ;;  %v1016_v13 = vld [vmem:[%s1362_s1 + $0x98] sm:$0xff]  ;;  %v1015_v16 = vld [vmem:[%s1362_s1 + $0x90] sm:$0xff]  ;;  %v33_v1 = vand.u32 15, %v1260_v56  ;;  %vm369_vm2 = vcmp.lt.s32.totalorder %v1260_v56, 7 }
   0x6   :  { %171 = vmatpush.bf16.msra.mxu0 %v1011_v3  ;;  %v1001_v11 = vld [vmem:[%s1362_s1 + $0x60] sm:$0xff]  ;;  %v1000_v14 = vld [vmem:[%s1362_s1 + $0x58] sm:$0xff]  ;;  %v999_v17 = vld [vmem:[%s1362_s1 + $0x50] sm:$0xff]  ;;  %v40_v63 = vand.u32 15, %v26_v58 }
   0x7   :  { %347 = vmatpush.bf16.msra.mxu2 %v1019_v4  ;;  %v1006_v18 = vld [vmem:[%s1362_s1 + $0x8] sm:$0xff]  ;;  %v1005_v21 = vld [vmem:[%s1362_s1] sm:$0xff]  ;;  %v1036_v26 = vld [vmem:[%s1365_s3 + $0x38] sm:$0xff]  ;;  %v47_v4 = vand.u32 15, %v27_v61  ;;  %vm1279_vm3 = vcmp.ge.s32.totalorder %v33_v1, 1 }
   0x8   :  { %263 = vmatpush.bf16.msra.mxu1 %v1003_v5  ;;  %v1014_v19 = vld [vmem:[%s1362_s1 + $0x88] sm:$0xff]  ;;  %v1013_v22 = vld [vmem:[%s1362_s1 + $0x80] sm:$0xff]  ;;  %v1028_v27 = vld [vmem:[%s1365_s3 + $0x78] sm:$0xff]  ;;  %497 = vmatpush.bf16.msra.mxu3 %v1036_v26  ;;  %vm1268_vm1 = vcmp.lt.s32.totalorder %v40_v63, 15 }
   0x9   :  { %v998_v20 = vld [vmem:[%s1362_s1 + $0x48] sm:$0xff]  ;;  %v997_v23 = vld [vmem:[%s1362_s1 + $0x40] sm:$0xff]  ;;  %v1044_v28 = vld [vmem:[%s1365_s3 + $0xb8] sm:$0xff]  ;;  %vm1285_vm4 = vcmp.ge.s32.totalorder %v47_v4, 1 }
   0xa   :  { %172 = vmatpush.bf16.msra.mxu0 %v1010_v6  ;;  %v995_v24 = vld [vmem:[%s1363_s0] sm:$0xff]  ;;  %v996_v25 = vld [vmem:[%s1363_s0 + $0x8] sm:$0xff]  ;;  %v1035_v29 = vld [vmem:[%s1365_s3 + $0x30] sm:$0xff] }
   0xb   :  { %348 = vmatpush.bf16.msra.mxu2 %v1018_v7  ;;  %v1027_v30 = vld [vmem:[%s1365_s3 + $0x70] sm:$0xff]  ;;  %v1034_v32 = vld [vmem:[%s1365_s3 + $0x28] sm:$0xff]  ;;  %v1033_v35 = vld [vmem:[%s1365_s3 + $0x20] sm:$0xff] }
   0xc   :  { %264 = vmatpush.bf16.msra.mxu1 %v1002_v8  ;;  %v1043_v31 = vld [vmem:[%s1365_s3 + $0xb0] sm:$0xff]  ;;  %498 = vmatpush.bf16.msra.mxu3 %v1035_v29  ;;  %v1026_v33 = vld [vmem:[%s1365_s3 + $0x68] sm:$0xff]  ;;  %v1025_v36 = vld [vmem:[%s1365_s3 + $0x60] sm:$0xff] }
   0xd   :  { %v1042_v34 = vld [vmem:[%s1365_s3 + $0xa8] sm:$0xff]  ;;  %v1041_v37 = vld [vmem:[%s1365_s3 + $0xa0] sm:$0xff]  ;;  %v1032_v38 = vld [vmem:[%s1365_s3 + $0x18] sm:$0xff] }
   0xe   :  { %173 = vmatpush.bf16.msra.mxu0 %v1009_v9  ;;  %v1024_v39 = vld [vmem:[%s1365_s3 + $0x58] sm:$0xff]  ;;  %v1031_v41 = vld [vmem:[%s1365_s3 + $0x10] sm:$0xff]  ;;  %v1030_v44 = vld [vmem:[%s1365_s3 + $0x8] sm:$0xff]  ;;  %v28_v9 = vadd.s32 24, %v1260_v56 }
   0xf   :  { %349 = vmatpush.bf16.msra.mxu2 %v1017_v10  ;;  %v1040_v40 = vld [vmem:[%s1365_s3 + $0x98] sm:$0xff]  ;;  %v1023_v42 = vld [vmem:[%s1365_s3 + $0x50] sm:$0xff]  ;;  %v1022_v45 = vld [vmem:[%s1365_s3 + $0x48] sm:$0xff] }
  0x10   :  { %265 = vmatpush.bf16.msra.mxu1 %v1001_v11  ;;  %499 = vmatpush.bf16.msra.mxu3 %v1034_v32  ;;  %v1039_v43 = vld [vmem:[%s1365_s3 + $0x90] sm:$0xff]  ;;  %v1245_v46 = vld [vmem:[%s1365_s3 + $0x88] sm:$0xff]  ;;  %v1029_v49 = vld [vmem:[%s1365_s3] sm:$0xff] }
  0x11   :  { %v1021_v50 = vld [vmem:[%s1365_s3 + $0x40] sm:$0xff] }
  0x12   :  { %174 = vmatpush.bf16.msra.mxu0 %v1008_v12  ;;  %v1257_v51 = vld [vmem:[%s1365_s3 + $0x80] sm:$0xff] }
  0x13   :  { %350 = vmatpush.bf16.msra.mxu2 %v1016_v13  ;;  %v1072_v13 = vld [vmem:[%s1364_s2] ss:$0 sm:$0xff] }
  0x14   :  { %266 = vmatpush.bf16.msra.mxu1 %v1000_v14  ;;  %500 = vmatpush.bf16.msra.mxu3 %v1033_v35 }
  0x16   :  { %175 = vmatpush.bf16.msra.mxu0 %v1007_v15 }
  0x17   :  { %351 = vmatpush.bf16.msra.mxu2 %v1015_v16 }
  0x18   :  { %267 = vmatpush.bf16.msra.mxu1 %v999_v17  ;;  %501 = vmatpush.bf16.msra.mxu3 %v1032_v38 }
  0x1a   :  { %176 = vmatpush.bf16.msra.mxu0 %v1006_v18 }
  0x1b   :  { %352 = vmatpush.bf16.msra.mxu2 %v1014_v19 }
  0x1c   :  { %268 = vmatpush.bf16.msra.mxu1 %v998_v20  ;;  %502 = vmatpush.bf16.msra.mxu3 %v1031_v41 }
  0x1e   :  { %177 = vmatpush.bf16.msra.mxu0 %v1005_v21  ;;  %v54_v21 = vand.u32 15, %v28_v9 }
  0x1f   :  { %353 = vmatpush.bf16.msra.mxu2 %v1013_v22 }
  0x20   :  { %269 = vmatpush.bf16.msra.mxu1 %v997_v23  ;;  %503 = vmatpush.bf16.msra.mxu3 %v1030_v44  ;;  %vm1302_vm5 = vcmp.lt.s32.totalorder %v54_v21, 15 }
  0x21   :  { %178 = vmatmul.bf16.vlgmr.msra.gmra.mxu0 %v995_v24 }
  0x22   :  { %354 = vmatmul.bf16.vlgmr.msra.gmra.mxu2 %v995_v24  ;;  %576 = vmatpush.bf16.msrb.mxu0 %v1028_v27 }
  0x23   :  { %270 = vmatmul.bf16.vlgmr.msra.gmra.mxu1 %v995_v24  ;;  %1056 = vmatpush.bf16.msrb.mxu2 %v1028_v27 }
  0x24   :  { %660 = vmatpush.bf16.msrb.mxu1 %v1044_v28  ;;  %504 = vmatpush.bf16.msra.mxu3 %v1029_v49 }
  0x26   :  { %577 = vmatpush.bf16.msrb.mxu0 %v1027_v30 }
  0x27   :  { %1057 = vmatpush.bf16.msrb.mxu2 %v1027_v30 }
  0x28   :  { %661 = vmatpush.bf16.msrb.mxu1 %v1043_v31  ;;  %1064 = vmatpush.bf16.msrb.mxu3 %v1044_v28 }
  0x2a   :  { %578 = vmatpush.bf16.msrb.mxu0 %v1026_v33 }
  0x2b   :  { %1058 = vmatpush.bf16.msrb.mxu2 %v1026_v33 }
  0x2c   :  { %662 = vmatpush.bf16.msrb.mxu1 %v1042_v34  ;;  %1065 = vmatpush.bf16.msrb.mxu3 %v1043_v31 }
  0x2e   :  { %579 = vmatpush.bf16.msrb.mxu0 %v1025_v36 }
  0x2f   :  { %1059 = vmatpush.bf16.msrb.mxu2 %v1025_v36 }
  0x30   :  { %663 = vmatpush.bf16.msrb.mxu1 %v1041_v37  ;;  %1066 = vmatpush.bf16.msrb.mxu3 %v1042_v34 }
  0x31   :  { %183 = vmatmul.bf16.gmra.mxu0 %v996_v25 }
  0x32   :  { %359 = vmatmul.bf16.gmra.mxu2 %v996_v25  ;;  %580 = vmatpush.bf16.msrb.mxu0 %v1024_v39 }
  0x33   :  { %275 = vmatmul.bf16.gmra.mxu1 %v996_v25  ;;  %1060 = vmatpush.bf16.msrb.mxu2 %v1024_v39 }
  0x34   :  { %664 = vmatpush.bf16.msrb.mxu1 %v1040_v40  ;;  %1067 = vmatpush.bf16.msrb.mxu3 %v1041_v37 }
  0x36   :  { %581 = vmatpush.bf16.msrb.mxu0 %v1023_v42 }
  0x37   :  { %1061 = vmatpush.bf16.msrb.mxu2 %v1023_v42 }
  0x38   :  { %665 = vmatpush.bf16.msrb.mxu1 %v1039_v43  ;;  %1068 = vmatpush.bf16.msrb.mxu3 %v1040_v40 }
  0x3a   :  { %582 = vmatpush.bf16.msrb.mxu0 %v1022_v45 }
  0x3b   :  { %1062 = vmatpush.bf16.msrb.mxu2 %v1022_v45 }
  0x3c   :  { %666 = vmatpush.bf16.msrb.mxu1 %v1245_v46  ;;  %1069 = vmatpush.bf16.msrb.mxu3 %v1039_v43 }
  0x3e   :  { %583 = vmatpush.bf16.msrb.mxu0 %v1021_v50 }
  0x3f   :  { %1063 = vmatpush.bf16.msrb.mxu2 %v1021_v50 }
  0x40   :  { %667 = vmatpush.bf16.msrb.mxu1 %v1257_v51  ;;  %1070 = vmatpush.bf16.msrb.mxu3 %v1245_v46 }
  0x44   :  { %1071 = vmatpush.bf16.msrb.mxu3 %v1257_v51 }
  0x9e   :  { %v179_v47 = vpop.f32.mrf.mxu0 }
  0x9f   :  { %v189_v0 = vrot.slane %v179_v47, 7 }
  0xa0   :  { %v271_v48 = vpop.f32.mrf.mxu1 }
  0xa5   :  { %v355_v52 = vpop.f32.mrf.mxu2 }
  0xa6   :  { %v181_v53 = vpop.f32.mrf.mxu0  ;;  %v365_v22 = vrot.slane %v355_v52, 1 }
  0xa7   :  { %v190_v60 = vrot.slane %v181_v53, 7 }
  0xa8   :  { %v273_v55 = vpop.f32.mrf.mxu1 }
  0xa9   :  { %v196_v2 = vsel %vm193_vm0, %v189_v0, %v190_v60 }
  0xaa   :  { %v274_v11 = vadd.f32 %v273_v55, %v196_v2 }
  0xad   :  { %v357_v57 = vpop.f32.mrf.mxu2 }
  0xae   :  { %v184_v59 = vpop.f32.mrf.mxu0  ;;  %v366_v6 = vrot.slane %v357_v57, 1 }
  0xaf   :  { %v191_v3 = vrot.slane %v184_v59, 7 }
  0xb0   :  { %v276_v62 = vpop.f32.mrf.mxu1  ;;  %v372_v29 = vsel %vm369_vm2, %v365_v22, %v366_v6 }
  0xb1   :  { %v195_v16 = vsel %vm193_vm0, %v190_v60, %v191_v3 }
  0xb2   :  { %v212_v24 = vsel %vm1285_vm4, %v195_v16, 0.0 }
  0xb3   :  { %v277_v34 = vadd.f32 %v276_v62, %v212_v24 }
  0xb5   :  { %v360_v5 = vpop.f32.mrf.mxu2 }
  0xb6   :  { %v367_v7 = vrot.slane %v360_v5, 1  ;;  %v186_v10 = vpop.f32.mrf.mxu0 }
  0xb7   :  { %v192_v14 = vrot.slane %v186_v10, 7 }
  0xb8   :  { %v371_v12 = vsel %vm369_vm2, %v366_v6, %v367_v7  ;;  %v278_v28 = vpop.f32.mrf.mxu1  ;;  %v1073_v6 = vld [vmem:[%s1366_s4] ss:$0 sm:$0xff] }
  0xb9   :  { %v387_v18 = vsel %vm1268_vm1, %v371_v12, 0.0  ;;  %v197_v20 = vsel %vm193_vm0, %v192_v14, %v189_v0  ;;  %v194_v27 = vsel %vm193_vm0, %v191_v3, %v192_v14 }
  0xba   :  { %v391_v19 = vadd.f32 %v387_v18, %v274_v11  ;;  %v210_v23 = vsel %vm1279_vm3, %v197_v20, 0.0  ;;  %v279_v35 = vadd.f32 %v278_v28, %v194_v27 }
  0xbb   :  { %v272_v26 = vadd.f32 %v271_v48, %v210_v23 }
  0xbc   :  { %v399_v25 = vadd.f32 %v1072_v13, %v391_v19 }
  0xbd   :  { %v362_v30 = vpop.f32.mrf.mxu2  ;;  %v390_v31 = vadd.f32 %v372_v29, %v272_v26 }
  0xbe   :  { %v368_v32 = vrot.slane %v362_v30, 1  ;;  %v407_v39 = vmul.f32 0.01, %v399_v25  ;;  %vm403_vm6 = vcmp.ge.f32.partialorder %v399_v25, 0.0 }
  0xbf   :  { %v398_v38 = vadd.f32 %v1072_v13, %v390_v31 }
  0xc0   :  { %v370_v36 = vsel %vm369_vm2, %v367_v7, %v368_v32  ;;  %v373_v37 = vsel %vm369_vm2, %v368_v32, %v365_v22  ;;  %v1315_v47 = vsel %vm403_vm6, %v399_v25, %v407_v39 }
  0xc1   :  { %v389_v40 = vsel %vm1302_vm5, %v373_v37, 0.0  ;;  %v392_v41 = vadd.f32 %v370_v36, %v277_v34  ;;  %vm402_vm7 = vcmp.ge.f32.partialorder %v398_v38, 0.0  ;;  %v406_v43 = vmul.f32 0.01, %v398_v38 }
  0xc2   :  { %v393_v42 = vadd.f32 %v389_v40, %v279_v35 }
  0xc3   :  { %v400_v44 = vadd.f32 %v1072_v13, %v392_v41  ;;  %v1313_v46 = vsel %vm402_vm7, %v398_v38, %v406_v43 }
  0xc4   :  { %v401_v45 = vadd.f32 %v1072_v13, %v393_v42  ;;  %v414_v48 = vpack.c.bf16 %v1315_v47, %v1313_v46 }
  0xc5   :  { %vm404_vm8 = vcmp.ge.f32.partialorder %v400_v44, 0.0  ;;  %v408_v49 = vmul.f32 0.01, %v400_v44 }
  0xc6   :  { %vm405_vm9 = vcmp.ge.f32.partialorder %v401_v45, 0.0  ;;  %v409_v50 = vmul.f32 0.01, %v401_v45  ;;  %505 = vmatmul.bf16.vlgmr.msra.gmra.mxu3 %v414_v48  ;;  %584 = vmatmul.bf16.vlgmr.msrb.gmra.mxu0 %v414_v48 }
  0xc7   :  { %v1319_v52 = vsel %vm404_vm8, %v400_v44, %v408_v49  ;;  %668 = vmatmul.bf16.vlgmr.msrb.gmra.mxu1 %v414_v48 }
  0xc8   :  { %v1321_v51 = vsel %vm405_vm9, %v401_v45, %v409_v50 }
  0xc9   :  { %v415_v53 = vpack.c.bf16 %v1321_v51, %v1319_v52 }
  0xcb   :  { %589 = vmatmul.bf16.vlgmr.msrb.gmra.mxu2 %v415_v53 }
  0xd6   :  { %510 = vmatmul.bf16.gmra.mxu3 %v415_v53 }
  0xe6   :  { %673 = vmatmul.bf16.vlgmr.msrb.gmra.mxu3 %v415_v53 }
 0x143   :  { %v585_v60 = vpop.f32.mrf.mxu0 }
 0x144   :  { %v669_v57 = vpop.f32.mrf.mxu1 }
 0x145   :  { %v679_v2 = vrot.slane %v669_v57, 1 }
 0x149   :  { %v506_v54 = vpop.f32.mrf.mxu3 }
 0x14a   :  { %v516_v62 = vrot.slane %v506_v54, 7 }
 0x14b   :  { %v587_v18 = vpop.f32.mrf.mxu0 }
 0x14c   :  { %v671_v59 = vpop.f32.mrf.mxu1 }
 0x14d   :  { %v680_v0 = vrot.slane %v671_v59, 1 }
 0x14e   :  { %v590_v10 = vpop.f32.mrf.mxu2 }
 0x14f   :  { %v685_v7 = vsel %vm369_vm2, %v679_v2, %v680_v0 }
 0x151   :  { %v508_v55 = vpop.f32.mrf.mxu3 }
 0x152   :  { %v517_v3 = vrot.slane %v508_v55, 7 }
 0x154   :  { %v522_v11 = vsel %vm193_vm0, %v516_v62, %v517_v3 }
 0x155   :  { %v588_v15 = vadd.f32 %v587_v18, %v522_v11 }
 0x156   :  { %v592_v31 = vpop.f32.mrf.mxu2 }
 0x159   :  { %v511_v58 = vpop.f32.mrf.mxu3 }
 0x15a   :  { %v518_v12 = vrot.slane %v511_v58, 7 }
 0x15c   :  { %v521_v20 = vsel %vm193_vm0, %v517_v3, %v518_v12 }
 0x15d   :  { %v526_v24 = vsel %vm1285_vm4, %v521_v20, 0.0 }
 0x15e   :  { %v591_v32 = vadd.f32 %v590_v10, %v526_v24 }
 0x161   :  { %v513_v61 = vpop.f32.mrf.mxu3 }
 0x162   :  { %v519_v63 = vrot.slane %v513_v61, 7 }
 0x164   :  { %v523_v1 = vsel %vm193_vm0, %v519_v63, %v516_v62  ;;  %v520_v26 = vsel %vm193_vm0, %v518_v12, %v519_v63 }
 0x165   :  { %v524_v4 = vsel %vm1279_vm3, %v523_v1, 0.0  ;;  %v593_v34 = vadd.f32 %v592_v31, %v520_v26 }
 0x166   :  { %v586_v5 = vadd.f32 %v585_v60, %v524_v4 }
 0x168   :  { %v691_v9 = vadd.f32 %v685_v7, %v586_v5 }
 0x169   :  { %v674_v13 = vpop.f32.mrf.mxu3 }
 0x16a   :  { %v699_v14 = vadd.f32 %v1073_v6, %v691_v9  ;;  %v681_v16 = vrot.slane %v674_v13, 1 }
 0x16c   :  { %v684_v19 = vsel %vm369_vm2, %v680_v0, %v681_v16  ;;  %v707_v22 = vmul.f32 0.01, %v699_v14  ;;  %vm703_vm10 = vcmp.ge.f32.partialorder %v699_v14, 0.0 }
 0x16d   :  { %v688_v21 = vsel %vm1268_vm1, %v684_v19, 0.0 }
 0x16e   :  { %v692_v23 = vadd.f32 %v688_v21, %v588_v15  ;;  %v711_v28 = vsel %vm703_vm10, %v699_v14, %v707_v22 }
 0x16f   :  { %v715_v36 = vadd.f32 %v711_v28, %v1313_v46 }
 0x170   :  { %v700_v25 = vadd.f32 %v1073_v6, %v692_v23 }
 0x171   :  { %v676_v27 = vpop.f32.mrf.mxu3 }
 0x172   :  { %vm704_vm11 = vcmp.ge.f32.partialorder %v700_v25, 0.0  ;;  %v708_v29 = vmul.f32 0.01, %v700_v25  ;;  %v682_v30 = vrot.slane %v676_v27, 1 }
 0x174   :  { %v712_v8 = vsel %vm704_vm11, %v700_v25, %v708_v29  ;;  %v683_v35 = vsel %vm369_vm2, %v681_v16, %v682_v30  ;;  %v686_v17 = vsel %vm369_vm2, %v682_v30, %v679_v2 }
 0x175   :  { %v716_v37 = vadd.f32 %v712_v8, %v1315_v47  ;;  %v690_v38 = vsel %vm1302_vm5, %v686_v17, 0.0  ;;  %v693_v39 = vadd.f32 %v683_v35, %v591_v32 }
 0x176   :  { %v694_v40 = vadd.f32 %v690_v38, %v593_v34 }
 0x177   :  { %v1048_v41 = vpack.c.bf16 %v716_v37, %v715_v36  ;;  %v701_v42 = vadd.f32 %v1073_v6, %v693_v39 }
 0x178   :  { %v702_v43 = vadd.f32 %v1073_v6, %v694_v40 }
 0x179   :  { %vm705_vm12 = vcmp.ge.f32.partialorder %v701_v42, 0.0  ;;  %v709_v44 = vmul.f32 0.01, %v701_v42  ;;  %1049 = vst [vmem:[%s1367_s5] sm:$0xff] %v1048_v41  }
 0x17a   :  { %vm706_vm13 = vcmp.ge.f32.partialorder %v702_v43, 0.0  ;;  %v710_v56 = vmul.f32 0.01, %v702_v43 }
 0x17b   :  { %v713_v45 = vsel %vm705_vm12, %v701_v42, %v709_v44 }
 0x17c   :  { %v714_v46 = vsel %vm706_vm13, %v702_v43, %v710_v56  ;;  %v717_v47 = vadd.f32 %v713_v45, %v1319_v52 }
 0x17d   :  { %v718_v33 = vadd.f32 %v714_v46, %v1321_v51 }
 0x17f   :  { %v1053_v48 = vpack.c.bf16 %v718_v33, %v717_v47 }
 0x181   :  { %1055 = vst [vmem:[%s1367_s5 + $0x8] sm:$0xff] %v1053_v48  }

</bundles_post_ra>
